<compile_context>
chip_gen: v5e
topology: v5e:2x2
jax: 0.10.0
libtpu: 0.0.40
codegen_flags: <defaults>
</compile_context>

<pallas_src>
import jax
import jax.numpy as jnp
from jax.experimental import pallas as pl
from jax.experimental.pallas import tpu as pltpu

_LANE = 128  # vreg lane width


def _round_up(x, m):
    return (x + m - 1) // m * m


def _pad2d(a, rows, cols):
    pr, pc = rows - a.shape[0], cols - a.shape[1]
    if pr == 0 and pc == 0:
        return a
    return jnp.pad(a, ((0, pr), (0, pc)))


def _vmem_capacity_bytes():
    """Per-core VMEM capacity; conservative 64 MiB (v7x per-TC) fallback."""
    try:
        return int(pltpu.get_tpu_info().vmem_capacity_bytes)
    except Exception:
        return 64 * 1024 * 1024


def _default_compute_dtype():
    """bf16 MXU operands (f32 accumulation) on bf16-native parts (v6e/v7x)."""
    try:
        kind = jax.devices()[0].device_kind.lower()
    except Exception:
        return None
    if any(tag in kind for tag in ("v6", "v7", "7x")):
        return jnp.bfloat16
    return None


class RNNParams:
    """Padded / compute-dtype-cast RNN parameters.

    Prepare ONCE and reuse across forward calls (or close over them under jit
    so they constant-fold) — this keeps per-call weight traffic to a single
    HBM read instead of a concat+pad+re-read every step.
    """

    def __init__(self, wi, wh, b1, wo, bo, input_size, hidden_size, output_size):
        self.wi, self.wh, self.b1, self.wo, self.bo = wi, wh, b1, wo, bo
        self.input_size = input_size
        self.hidden_size = hidden_size
        self.output_size = output_size


def prepare_rnn_params(wi, bi, wh, bh, wo, bo, *, compute_dtype="auto"):
    """One-time weight prep.

    wi: (input_size, hidden_size), wh: (hidden_size, hidden_size),
    wo: (hidden_size, output_size); biases are (1, out) or (out,).
    Pads all feature/contraction dims to multiples of 128 (lane-dense loads,
    full MXU passes), fuses bi+bh, and optionally casts weights to the MXU
    compute dtype ("auto" = bf16 on v6e/v7x, param dtype elsewhere).  Biases
    stay f32 (added after f32 accumulation).
    """
    input_size, hidden_size = wi.shape
    output_size = wo.shape[1]

    if isinstance(compute_dtype, str) and compute_dtype == "auto":
        compute_dtype = _default_compute_dtype()

    i_pad = _round_up(input_size, _LANE)
    h_pad = _round_up(hidden_size, _LANE)
    o_pad = _round_up(output_size, _LANE)

    b1 = (jnp.reshape(bi, (1, hidden_size)).astype(jnp.float32)
          + jnp.reshape(bh, (1, hidden_size)).astype(jnp.float32))
    bo2 = jnp.reshape(bo, (1, output_size)).astype(jnp.float32)

    wdt = compute_dtype if compute_dtype is not None else wi.dtype
    wi_p = _pad2d(wi.astype(wdt), i_pad, h_pad)
    wh_p = _pad2d(wh.astype(wdt), h_pad, h_pad)
    wo_p = _pad2d(wo.astype(wdt), h_pad, o_pad)   # padded rows are ZERO (invariant)
    b1_p = _pad2d(b1, 1, h_pad)
    bo_p = _pad2d(bo2, 1, o_pad)

    return RNNParams(wi_p, wh_p, b1_p, wo_p, bo_p,
                     input_size, hidden_size, output_size)


def _rnn_block_kernel(x_ref, h_ref, wi_ref, wh_ref, b1_ref, wo_ref, bo_ref,
                      out_ref, hid_ref):
    """One batch tile: hidden = sigmoid(x@Wi + h@Wh + b1); out = hidden@Wo + bo."""
    cdt = wi_ref.dtype

    # Fused i2h + h2h: two MXU pushes into one shared f32 accumulation
    # (no HBM-side [x|h] concat needed).
    pre = jnp.dot(x_ref[...].astype(cdt), wi_ref[...],
                  preferred_element_type=jnp.float32)
    pre = pre + jnp.dot(h_ref[...].astype(cdt), wh_ref[...],
                        preferred_element_type=jnp.float32)
    pre = pre + b1_ref[...].astype(jnp.float32)

    # Elementwise path stays f32 (v5e has no bf16 VPU/EUP).
    hidden = jax.nn.sigmoid(pre)

    # Round ONCE; the same value is stored and fed into h2o, so a recurrent
    # caller sees exactly the state the kernel used.
    hidden_c = hidden.astype(hid_ref.dtype)
    hid_ref[...] = hidden_c

    out = jnp.dot(hidden_c.astype(cdt), wo_ref[...],
                  preferred_element_type=jnp.float32)
    out_ref[...] = (out + bo_ref[...].astype(jnp.float32)).astype(out_ref.dtype)


def rnn_block_forward(x, h, params: RNNParams, *, batch_tile=512):
    """x: (B, input_size), h: (B, hidden_size), params from prepare_rnn_params."""
    B, input_size = x.shape
    assert input_size == params.input_size, "x feature dim mismatch"
    assert h.shape == (B, params.hidden_size), "hidden state shape mismatch"

    hidden_size, output_size = params.hidden_size, params.output_size
    i_pad, h_pad = params.wi.shape
    o_pad = params.wo.shape[1]

    out_dtype = x.dtype
    # Store hid at the precision it was actually computed at (bf16 when the MXU
    # path is bf16) — avoids doubling the (B,H) writeback for no accuracy gain.
    hid_dtype = (params.wi.dtype
                 if jnp.dtype(params.wi.dtype).itemsize < 4 else out_dtype)

    # Batch-tile alignment: native sublane tile depends on the narrowest
    # activation dtype (f32 -> 8, bf16 -> 16, int8/fp8 -> 32).
    min_item = min(jnp.dtype(d).itemsize
                   for d in (x.dtype, h.dtype, out_dtype, hid_dtype))
    tb_align = 32 // min_item
    TB = _round_up(min(batch_tile, _round_up(B, tb_align)), tb_align)
    B_pad = _round_up(B, TB)
    n_tiles = B_pad // TB

    # Per-call activation prep: one zero-pad per activation (no concat; no-op
    # when B / input_size / hidden_size are already tile-aligned).
    x_p = _pad2d(x, B_pad, i_pad)
    h_p = _pad2d(h, B_pad, h_pad)

    # VMEM budget: single-buffered resident weights + double-buffered tiles.
    wbytes = sum(int(a.size) * jnp.dtype(a.dtype).itemsize
                 for a in (params.wi, params.wh, params.b1, params.wo, params.bo))
    abytes = 2 * TB * (i_pad * jnp.dtype(x_p.dtype).itemsize
                       + h_pad * jnp.dtype(h_p.dtype).itemsize
                       + o_pad * jnp.dtype(out_dtype).itemsize
                       + h_pad * jnp.dtype(hid_dtype).itemsize)
    vmem_needed = wbytes + abytes
    cap = _vmem_capacity_bytes()

    cp_kwargs = dict(dimension_semantics=("parallel",))  # v7x: shard tiles over TCs
    limit = int(vmem_needed * 1.25) + (1 << 20)
    if limit > 16 * 1024 * 1024:            # above the smallest scoped default (v5e)
        cp_kwargs["vmem_limit_bytes"] = min(limit, int(cap * 0.9))
    # TODO(synk): H-tiled fallback when wbytes alone exceeds ~0.9*cap (v7x).

    tile = lambda i: (i, 0)                  # activations: streamed per batch tile
    resident = lambda: pl.BlockSpec(memory_space=pltpu.MemorySpace.VMEM)

    out_p, hid_p = pl.pallas_call(
        _rnn_block_kernel,
        out_shape=(
            jax.ShapeDtypeStruct((B_pad, o_pad), out_dtype),
            jax.ShapeDtypeStruct((B_pad, h_pad), hid_dtype),
        ),
        grid=(n_tiles,),
        in_specs=[
            pl.BlockSpec((TB, i_pad), tile),   # x
            pl.BlockSpec((TB, h_pad), tile),   # h
            resident(),                        # Wi   (VMEM-resident, single copy)
            resident(),                        # Wh
            resident(),                        # bi + bh (f32)
            resident(),                        # Wo
            resident(),                        # bo  (f32)
        ],
        out_specs=(
            pl.BlockSpec((TB, o_pad), tile),
            pl.BlockSpec((TB, h_pad), tile),
        ),
        compiler_params=pltpu.CompilerParams(**cp_kwargs),
    )(x_p, h_p, params.wi, params.wh, params.b1, params.wo, params.bo)

    # Slice off lane/batch padding.
    return out_p[:B, :output_size], hid_p[:B, :hidden_size]


def reference_forward(x, h, wi, bi, wh, bh, wo, bo):
    hidden = jax.nn.sigmoid(x @ wi + bi + h @ wh + bh)
    out = hidden @ wo + bo
    return out, hidden


if __name__ == "__main__":
    # Small shapes consistent with the module's forward.
    batch = 2
    input_size = 32
    hidden_size = 64
    output_size = 16

    key = jax.random.PRNGKey(0)
    k_x, k_h, k_wi, k_bi, k_wh, k_bh, k_wo, k_bo = jax.random.split(key, 8)

    x = jax.random.normal(k_x, (batch, input_size), dtype=jnp.float32)
    h = jax.random.normal(k_h, (batch, hidden_size), dtype=jnp.float32)

    # Deterministic parameter init (shapes match nn.Linear, stored as (in, out)).
    wi = jax.random.normal(k_wi, (input_size, hidden_size), dtype=jnp.float32) * 0.1
    bi = jax.random.normal(k_bi, (1, hidden_size), dtype=jnp.float32) * 0.1
    wh = jax.random.normal(k_wh, (hidden_size, hidden_size), dtype=jnp.float32) * 0.1
    bh = jax.random.normal(k_bh, (1, hidden_size), dtype=jnp.float32) * 0.1
    wo = jax.random.normal(k_wo, (hidden_size, output_size), dtype=jnp.float32) * 0.1
    bo = jax.random.normal(k_bo, (1, output_size), dtype=jnp.float32) * 0.1

    out_exp, hid_exp = reference_forward(x, h, wi, bi, wh, bh, wo, bo)

    # f32 compute path — tight tolerance.
    params_f32 = prepare_rnn_params(wi, bi, wh, bh, wo, bo, compute_dtype=jnp.float32)
    out, hid = rnn_block_forward(x, h, params_f32)
    jax.block_until_ready((out, hid))
    assert out.shape == (batch, output_size)
    assert hid.shape == (batch, hidden_size)
    assert jnp.allclose(out, out_exp, atol=2e-5, rtol=2e-5)
    assert jnp.allclose(hid, hid_exp, atol=2e-5, rtol=2e-5)

    # Explicit bf16 MXU-operand path (f32 accumulation, bf16 hid) — loose tolerance.
    params_bf16 = prepare_rnn_params(wi, bi, wh, bh, wo, bo, compute_dtype=jnp.bfloat16)
    out_bf, hid_bf = rnn_block_forward(x, h, params_bf16)
    jax.block_until_ready((out_bf, hid_bf))
    assert out_bf.shape == (batch, output_size)
    assert hid_bf.shape == (batch, hidden_size)
    assert jnp.allclose(out_bf.astype(jnp.float32), out_exp, atol=5e-2, rtol=5e-2)
    assert jnp.allclose(hid_bf.astype(jnp.float32), hid_exp, atol=5e-2, rtol=5e-2)

    # Generation-aware default ("auto": bf16 on v6e/v7x, param dtype elsewhere).
    params_auto = prepare_rnn_params(wi, bi, wh, bh, wo, bo)
    out_a, hid_a = rnn_block_forward(x, h, params_auto)
    jax.block_until_ready((out_a, hid_a))
    assert jnp.allclose(out_a.astype(jnp.float32), out_exp, atol=5e-2, rtol=5e-2)
    assert jnp.allclose(hid_a.astype(jnp.float32), hid_exp, atol=5e-2, rtol=5e-2)

    print("KERNEL_OK")
</pallas_src>

<mosaic_0001>
module attributes {stable_mosaic.version = 11 : i64} {
  func.func @_rnn_block_kernel(%arg0: i32, %arg1: memref<8x128xf32, #tpu.memory_space<vmem>>, %arg2: memref<8x128xf32, #tpu.memory_space<vmem>>, %arg3: memref<128x128xf32, #tpu.memory_space<vmem>>, %arg4: memref<128x128xf32, #tpu.memory_space<vmem>>, %arg5: memref<1x128xf32, #tpu.memory_space<vmem>>, %arg6: memref<128x128xf32, #tpu.memory_space<vmem>>, %arg7: memref<1x128xf32, #tpu.memory_space<vmem>>, %arg8: memref<8x128xf32, #tpu.memory_space<vmem>>, %arg9: memref<8x128xf32, #tpu.memory_space<vmem>>) attributes {dimension_semantics = [#tpu.dimension_semantics<parallel>], iteration_bounds = array<i64: 1>, scalar_prefetch = 0 : i64, scratch_operands = 0 : i64, tpu.core_type = #tpu.core_type<tc>, window_params = [{transform_indices = @transform_0, window_bounds = array<i64: 8, 128>}, {transform_indices = @transform_1, window_bounds = array<i64: 8, 128>}, {pipeline_mode = #tpu.pipeline_mode<synchronous>, transform_indices = @transform_2, window_bounds = array<i64: 128, 128>}, {pipeline_mode = #tpu.pipeline_mode<synchronous>, transform_indices = @transform_3, window_bounds = array<i64: 128, 128>}, {pipeline_mode = #tpu.pipeline_mode<synchronous>, transform_indices = @transform_4, window_bounds = array<i64: 1, 128>}, {pipeline_mode = #tpu.pipeline_mode<synchronous>, transform_indices = @transform_5, window_bounds = array<i64: 128, 128>}, {pipeline_mode = #tpu.pipeline_mode<synchronous>, transform_indices = @transform_6, window_bounds = array<i64: 1, 128>}, {transform_indices = @transform_7, window_bounds = array<i64: 8, 128>}, {transform_indices = @transform_8, window_bounds = array<i64: 8, 128>}]} {
    %c0 = arith.constant 0 : index
    %c0_0 = arith.constant 0 : index
    %0 = vector.load %arg1[%c0, %c0_0] : memref<8x128xf32, #tpu.memory_space<vmem>>, vector<8x128xf32>
    %c0_1 = arith.constant 0 : index
    %c0_2 = arith.constant 0 : index
    %1 = vector.load %arg3[%c0_1, %c0_2] : memref<128x128xf32, #tpu.memory_space<vmem>>, vector<128x128xf32>
    %cst = arith.constant dense<0.000000e+00> : vector<8x128xf32>
    %2 = tpu.matmul %0, %1, %cst {dimension_numbers = #tpu.dot_dimension_numbers<[1], [0], [0], [1], [0, 0, 1, 1], [], []>} : vector<8x128xf32>, vector<128x128xf32>, vector<8x128xf32> -> vector<8x128xf32>
    %c0_3 = arith.constant 0 : index
    %c0_4 = arith.constant 0 : index
    %3 = vector.load %arg2[%c0_3, %c0_4] : memref<8x128xf32, #tpu.memory_space<vmem>>, vector<8x128xf32>
    %c0_5 = arith.constant 0 : index
    %c0_6 = arith.constant 0 : index
    %4 = vector.load %arg4[%c0_5, %c0_6] : memref<128x128xf32, #tpu.memory_space<vmem>>, vector<128x128xf32>
    %cst_7 = arith.constant dense<0.000000e+00> : vector<8x128xf32>
    %5 = tpu.matmul %3, %4, %cst_7 {dimension_numbers = #tpu.dot_dimension_numbers<[1], [0], [0], [1], [0, 0, 1, 1], [], []>} : vector<8x128xf32>, vector<128x128xf32>, vector<8x128xf32> -> vector<8x128xf32>
    %6 = arith.addf %2, %5 : vector<8x128xf32>
    %c0_8 = arith.constant 0 : index
    %c0_9 = arith.constant 0 : index
    %7 = vector.load %arg5[%c0_8, %c0_9] : memref<1x128xf32, #tpu.memory_space<vmem>>, vector<1x128xf32>
    %8 = vector.broadcast %7 : vector<1x128xf32> to vector<8x128xf32>
    %9 = arith.addf %6, %8 : vector<8x128xf32>
    %10 = arith.negf %9 : vector<8x128xf32>
    %11 = math.exp %10 : vector<8x128xf32>
    %cst_10 = arith.constant 1.000000e+00 : f32
    %12 = vector.broadcast %cst_10 : f32 to vector<8x128xf32>
    %13 = arith.addf %12, %11 : vector<8x128xf32>
    %14 = arith.divf %12, %13 : vector<8x128xf32>
    %c0_11 = arith.constant 0 : index
    %c0_12 = arith.constant 0 : index
    %15 = vector.load %arg9[%c0_11, %c0_12] : memref<8x128xf32, #tpu.memory_space<vmem>>, vector<8x128xf32>
    tpu.vector_store %arg9[%c0_11, %c0_12], %14 {strides = array<i32>} : memref<8x128xf32, #tpu.memory_space<vmem>>, vector<8x128xf32>,
    %c0_13 = arith.constant 0 : index
    %c0_14 = arith.constant 0 : index
    %16 = vector.load %arg6[%c0_13, %c0_14] : memref<128x128xf32, #tpu.memory_space<vmem>>, vector<128x128xf32>
    %cst_15 = arith.constant dense<0.000000e+00> : vector<8x128xf32>
    %17 = tpu.matmul %14, %16, %cst_15 {dimension_numbers = #tpu.dot_dimension_numbers<[1], [0], [0], [1], [0, 0, 1, 1], [], []>} : vector<8x128xf32>, vector<128x128xf32>, vector<8x128xf32> -> vector<8x128xf32>
    %c0_16 = arith.constant 0 : index
    %c0_17 = arith.constant 0 : index
    %18 = vector.load %arg7[%c0_16, %c0_17] : memref<1x128xf32, #tpu.memory_space<vmem>>, vector<1x128xf32>
    %19 = vector.broadcast %18 : vector<1x128xf32> to vector<8x128xf32>
    %20 = arith.addf %17, %19 : vector<8x128xf32>
    %c0_18 = arith.constant 0 : index
    %c0_19 = arith.constant 0 : index
    %21 = vector.load %arg8[%c0_18, %c0_19] : memref<8x128xf32, #tpu.memory_space<vmem>>, vector<8x128xf32>
    tpu.vector_store %arg8[%c0_18, %c0_19], %20 {strides = array<i32>} : memref<8x128xf32, #tpu.memory_space<vmem>>, vector<8x128xf32>,
    return
  }
  func.func @transform_0(%arg0: i32) -> (i32, i32) {
    %c0_i32 = arith.constant 0 : i32
    %c0_i32_0 = arith.constant 0 : i32
    return %arg0, %c0_i32 : i32, i32
  }
  func.func @transform_1(%arg0: i32) -> (i32, i32) {
    %c0_i32 = arith.constant 0 : i32
    %c0_i32_0 = arith.constant 0 : i32
    return %arg0, %c0_i32 : i32, i32
  }
  func.func @transform_2(%arg0: i32) -> (i32, i32) {
    %c0_i32 = arith.constant 0 : i32
    %c0_i32_0 = arith.constant 0 : i32
    %c0_i32_1 = arith.constant 0 : i32
    return %c0_i32, %c0_i32_0 : i32, i32
  }
  func.func @transform_3(%arg0: i32) -> (i32, i32) {
    %c0_i32 = arith.constant 0 : i32
    %c0_i32_0 = arith.constant 0 : i32
    %c0_i32_1 = arith.constant 0 : i32
    return %c0_i32, %c0_i32_0 : i32, i32
  }
  func.func @transform_4(%arg0: i32) -> (i32, i32) {
    %c0_i32 = arith.constant 0 : i32
    %c0_i32_0 = arith.constant 0 : i32
    %c0_i32_1 = arith.constant 0 : i32
    return %c0_i32, %c0_i32_0 : i32, i32
  }
  func.func @transform_5(%arg0: i32) -> (i32, i32) {
    %c0_i32 = arith.constant 0 : i32
    %c0_i32_0 = arith.constant 0 : i32
    %c0_i32_1 = arith.constant 0 : i32
    return %c0_i32, %c0_i32_0 : i32, i32
  }
  func.func @transform_6(%arg0: i32) -> (i32, i32) {
    %c0_i32 = arith.constant 0 : i32
    %c0_i32_0 = arith.constant 0 : i32
    %c0_i32_1 = arith.constant 0 : i32
    return %c0_i32, %c0_i32_0 : i32, i32
  }
  func.func @transform_7(%arg0: i32) -> (i32, i32) {
    %c0_i32 = arith.constant 0 : i32
    %c0_i32_0 = arith.constant 0 : i32
    return %arg0, %c0_i32 : i32, i32
  }
  func.func @transform_8(%arg0: i32) -> (i32, i32) {
    %c0_i32 = arith.constant 0 : i32
    %c0_i32_0 = arith.constant 0 : i32
    return %arg0, %c0_i32 : i32, i32
  }
}

</mosaic_0001>

<bundles_post_ra>
// kernel: tpu_custom_call.1
= control target key start
LH: loop header
LB: loop body
LE: loop exit
PB: predicated region body
PF: predicated region fallthrough
CT: control target
= control target key end

     0   :  { %14 = vsyncpa [#allocation3], 0  ;;  %s554_s0 = inlined_call_operand.hbm [shape: f32[8,128], index: 0, kind: input, shape index: {}]   ;;  %s555_s1 = inlined_call_operand.hbm [shape: f32[8,128], index: 1, kind: input, shape index: {}]   ;;  %s556_s2 = inlined_call_operand.hbm [shape: f32[128,128], index: 2, kind: input, shape index: {}]   ;;  %s557_s3 = inlined_call_operand.hbm [shape: f32[128,128], index: 3, kind: input, shape index: {}]   ;;  %s558_s4 = inlined_call_operand.vmem [shape: f32[1,128], index: 4, kind: input, shape index: {}]   ;;  %s559_s5 = inlined_call_operand.hbm [shape: f32[128,128], index: 5, kind: input, shape index: {}]   ;;  %s560_s6 = inlined_call_operand.vmem [shape: f32[1,128], index: 6, kind: input, shape index: {}]   ;;  %s561_s7 = inlined_call_operand.hbm [shape: f32[8,128], index: 7, kind: output, shape index: {0}]   ;;  %s562_s8 = inlined_call_operand.hbm [shape: f32[8,128], index: 8, kind: output, shape index: {1}]  }
   0x1   :  { %15 = vsyncpa [#allocation6], 0 }
   0x2   :  { %16 = vsyncpa [#allocation9], 0 }
   0x3   :  { %17 = vsyncpa [#allocation4], 0  ;;  %s35_s29 = sshll.u32 %s555_s1, 4  ;;  %s36_s29 = int_to_ptr.hbm [resolvable:$true] %s35_s29 }
   0x4   :  { %18 = vsyncpa [#allocation13], 0  ;;  %s473_s30 = smov [#allocation5]   ;;  %s58_s12 = sshll.u32 %s557_s3, 4  ;;  %s59_s12 = int_to_ptr.hbm [resolvable:$true] %s58_s12 }
   0x5   :  { %s37_s9 = sshll.u32 %s473_s30, 4  ;;  %s474_s13 = smov [#allocation8]   ;;  %s38_s9 = int_to_ptr.vmem [resolvable:$true] %s37_s9 }
   0x6   :  { %40 = dma.hbm_to_vmem [thread:$0]  %s36_s29, 128, %s38_s9, [#allocation6]  }
   0x7   :  { %s60_s14 = sshll.u32 %s474_s13, 4  ;;  %s24_s17 = sshll.u32 %s554_s0, 4  ;;  %s61_s14 = int_to_ptr.vmem [resolvable:$true] %s60_s14  ;;  %s25_s17 = int_to_ptr.hbm [resolvable:$true] %s24_s17 }
   0x8   :  { %s475_s1 = smov 128   ;;  %s476_s18 = smov 8  }
   0x9   :  { %66 = dma.hbm_to_vmem [thread:$0]  %s59_s12, 2048, %s61_s14, [#allocation9], %s475_s1, %s475_s1, %s476_s18  }
   0xa   :  { %s45_s21 = sshll.u32 %s556_s2, 4  ;;  %s477_s22 = smov [#allocation2]   ;;  %s46_s21 = int_to_ptr.hbm [resolvable:$true] %s45_s21 }
   0xb   :  { %s26_s23 = sshll.u32 %s477_s22, 4  ;;  %s478_s3 = smov [#allocation7]   ;;  %s27_s23 = int_to_ptr.vmem [resolvable:$true] %s26_s23 }
   0xc   :  { %29 = dma.hbm_to_vmem [thread:$0]  %s25_s17, 128, %s27_s23, [#allocation3]  }
   0xd   :  { %s47_s24 = sshll.u32 %s478_s3, 4  ;;  %s73_s0 = sshll.u32 %s559_s5, 4  ;;  %s48_s24 = int_to_ptr.vmem [resolvable:$true] %s47_s24  ;;  %s74_s0 = int_to_ptr.hbm [resolvable:$true] %s73_s0 }
   0xe   :  { %53 = dma.hbm_to_vmem [thread:$0]  %s46_s21, 2048, %s48_s24, [#allocation6], %s475_s1, %s475_s1, %s476_s18  }
   0xf   :  { %s479_s27 = smov [#allocation10]  }
  0x10   :  { %s75_s28 = sshll.u32 %s479_s27, 4  ;;  %s76_s28 = int_to_ptr.vmem [resolvable:$true] %s75_s28 }
  0x11   :  { %81 = dma.hbm_to_vmem [thread:$0]  %s74_s0, 2048, %s76_s28, [#allocation9], %s475_s1, %s475_s1, %s476_s18  }
  0x12   :  { %463 = dma.done.wait [#allocation3], 128  }
  0x13   :  { %464 = vsyncadd [#allocation3], 4294967168 }
  0x14   :  { %465 = dma.done.wait [#allocation6], 2176  }
  0x15   :  { %466 = vsyncadd [#allocation6], 4294965120 }
  0x16   :  { %467 = dma.done.wait [#allocation9], 4096  }
  0x17   :  { %468 = vsyncadd [#allocation9], 4294963200  ;;  %v137_v0 = vld [vmem:[#allocation8 + $0x78] sm:$0xff]  ;;  %v136_v2 = vld [vmem:[#allocation8 + $0x70] sm:$0xff]  ;;  %s262_s10 = sshll.u32 %s562_s8, 4  ;;  %s481_s13 = smov [#allocation11]   ;;  %s263_s10 = int_to_ptr.hbm [resolvable:$true] %s262_s10 }
  0x18   :  { %v120_v1 = vld [vmem:[#allocation7 + $0x78] sm:$0xff]  ;;  %138 = vmatpush.msra.mxu0 %v137_v0  ;;  %v119_v3 = vld [vmem:[#allocation7 + $0x70] sm:$0xff]  ;;  %v135_v4 = vld [vmem:[#allocation8 + $0x68] sm:$0xff]  ;;  %s249_s14 = sshll.u32 %s481_s13, 4  ;;  %s251_s17 = sshll.u32 %s561_s7, 4  ;;  %s250_s14 = int_to_ptr.vmem [resolvable:$true] %s249_s14  ;;  %s252_s17 = int_to_ptr.hbm [resolvable:$true] %s251_s17 }
  0x19   :  { %158 = vmatpush.msra.mxu1 %v120_v1  ;;  %v118_v5 = vld [vmem:[#allocation7 + $0x68] sm:$0xff]  ;;  %v134_v6 = vld [vmem:[#allocation8 + $0x60] sm:$0xff]  ;;  %v133_v8 = vld [vmem:[#allocation8 + $0x58] sm:$0xff] }
  0x1a   :  { %139 = vmatpush.msra.mxu0 %v136_v2  ;;  %v117_v7 = vld [vmem:[#allocation7 + $0x60] sm:$0xff]  ;;  %v116_v9 = vld [vmem:[#allocation7 + $0x58] sm:$0xff]  ;;  %v132_v10 = vld [vmem:[#allocation8 + $0x50] sm:$0xff] }
  0x1b   :  { %159 = vmatpush.msra.mxu1 %v119_v3  ;;  %v115_v11 = vld [vmem:[#allocation7 + $0x50] sm:$0xff]  ;;  %v131_v12 = vld [vmem:[#allocation8 + $0x48] sm:$0xff]  ;;  %v130_v14 = vld [vmem:[#allocation8 + $0x40] sm:$0xff] }
  0x1c   :  { %140 = vmatpush.msra.mxu0 %v135_v4  ;;  %v114_v13 = vld [vmem:[#allocation7 + $0x48] sm:$0xff]  ;;  %v113_v15 = vld [vmem:[#allocation7 + $0x40] sm:$0xff]  ;;  %v129_v16 = vld [vmem:[#allocation8 + $0x38] sm:$0xff] }
  0x1d   :  { %160 = vmatpush.msra.mxu1 %v118_v5  ;;  %v112_v17 = vld [vmem:[#allocation7 + $0x38] sm:$0xff]  ;;  %v128_v18 = vld [vmem:[#allocation8 + $0x30] sm:$0xff]  ;;  %v127_v20 = vld [vmem:[#allocation8 + $0x28] sm:$0xff] }
  0x1e   :  { %141 = vmatpush.msra.mxu0 %v134_v6  ;;  %v111_v19 = vld [vmem:[#allocation7 + $0x30] sm:$0xff]  ;;  %v110_v21 = vld [vmem:[#allocation7 + $0x28] sm:$0xff]  ;;  %v126_v22 = vld [vmem:[#allocation8 + $0x20] sm:$0xff] }
  0x1f   :  { %161 = vmatpush.msra.mxu1 %v117_v7  ;;  %v109_v23 = vld [vmem:[#allocation7 + $0x20] sm:$0xff]  ;;  %v125_v24 = vld [vmem:[#allocation8 + $0x18] sm:$0xff]  ;;  %v124_v26 = vld [vmem:[#allocation8 + $0x10] sm:$0xff] }
  0x20   :  { %142 = vmatpush.msra.mxu0 %v133_v8  ;;  %v108_v25 = vld [vmem:[#allocation7 + $0x18] sm:$0xff]  ;;  %v107_v27 = vld [vmem:[#allocation7 + $0x10] sm:$0xff]  ;;  %v123_v28 = vld [vmem:[#allocation8 + $0x8] sm:$0xff] }
  0x21   :  { %162 = vmatpush.msra.mxu1 %v116_v9  ;;  %v106_v29 = vld [vmem:[#allocation7 + $0x8] sm:$0xff]  ;;  %v122_v30 = vld [vmem:[#allocation8] sm:$0xff]  ;;  %v121_v32 = vld [vmem:[#allocation5] sm:$0xff] }
  0x22   :  { %143 = vmatpush.msra.mxu0 %v132_v10  ;;  %v105_v31 = vld [vmem:[#allocation7] sm:$0xff]  ;;  %v104_v33 = vld [vmem:[#allocation2] sm:$0xff]  ;;  %v218_v34 = vld [vmem:[#allocation10 + $0x78] sm:$0xff] }
  0x23   :  { %163 = vmatpush.msra.mxu1 %v115_v11  ;;  %223 = vmatpush.msra.mxu2 %v218_v34  ;;  %v217_v35 = vld [vmem:[#allocation10 + $0x70] sm:$0xff]  ;;  %v216_v36 = vld [vmem:[#allocation10 + $0x68] sm:$0xff]  ;;  %v215_v37 = vld [vmem:[#allocation10 + $0x60] sm:$0xff] }
  0x24   :  { %144 = vmatpush.msra.mxu0 %v131_v12  ;;  %v214_v38 = vld [vmem:[#allocation10 + $0x58] sm:$0xff]  ;;  %v213_v39 = vld [vmem:[#allocation10 + $0x50] sm:$0xff]  ;;  %v212_v40 = vld [vmem:[#allocation10 + $0x48] sm:$0xff] }
  0x25   :  { %164 = vmatpush.msra.mxu1 %v114_v13  ;;  %224 = vmatpush.msra.mxu2 %v217_v35  ;;  %v211_v41 = vld [vmem:[#allocation10 + $0x40] sm:$0xff]  ;;  %v210_v42 = vld [vmem:[#allocation10 + $0x38] sm:$0xff]  ;;  %v209_v43 = vld [vmem:[#allocation10 + $0x30] sm:$0xff] }
  0x26   :  { %145 = vmatpush.msra.mxu0 %v130_v14  ;;  %v208_v44 = vld [vmem:[#allocation10 + $0x28] sm:$0xff]  ;;  %v207_v45 = vld [vmem:[#allocation10 + $0x20] sm:$0xff]  ;;  %v206_v46 = vld [vmem:[#allocation10 + $0x18] sm:$0xff] }
  0x27   :  { %165 = vmatpush.msra.mxu1 %v113_v15  ;;  %225 = vmatpush.msra.mxu2 %v216_v36  ;;  %v205_v47 = vld [vmem:[#allocation10 + $0x10] sm:$0xff]  ;;  %v204_v48 = vld [vmem:[#allocation10 + $0x8] sm:$0xff]  ;;  %v203_v49 = vld [vmem:[#allocation10] sm:$0xff] }
  0x28   :  { %146 = vmatpush.msra.mxu0 %v129_v16  ;;  %v289_v50 = vld [vmem:[%s558_s4] ss:$0 sm:$0xff]  ;;  %s480_s4 = smov [#allocation12]  }
  0x29   :  { %166 = vmatpush.msra.mxu1 %v112_v17  ;;  %226 = vmatpush.msra.mxu2 %v215_v37  ;;  %s260_s29 = sshll.u32 %s480_s4, 4  ;;  %v290_v4 = vld [vmem:[%s560_s6] ss:$0 sm:$0xff]  ;;  %s261_s29 = int_to_ptr.vmem [resolvable:$true] %s260_s29 }
  0x2a   :  { %147 = vmatpush.msra.mxu0 %v128_v18 }
  0x2b   :  { %167 = vmatpush.msra.mxu1 %v111_v19  ;;  %227 = vmatpush.msra.mxu2 %v214_v38 }
  0x2c   :  { %148 = vmatpush.msra.mxu0 %v127_v20 }
  0x2d   :  { %168 = vmatpush.msra.mxu1 %v110_v21  ;;  %228 = vmatpush.msra.mxu2 %v213_v39 }
  0x2e   :  { %149 = vmatpush.msra.mxu0 %v126_v22 }
  0x2f   :  { %169 = vmatpush.msra.mxu1 %v109_v23  ;;  %229 = vmatpush.msra.mxu2 %v212_v40 }
  0x30   :  { %150 = vmatpush.msra.mxu0 %v125_v24 }
  0x31   :  { %170 = vmatpush.msra.mxu1 %v108_v25  ;;  %230 = vmatpush.msra.mxu2 %v211_v41 }
  0x32   :  { %151 = vmatpush.msra.mxu0 %v124_v26 }
  0x33   :  { %171 = vmatpush.msra.mxu1 %v107_v27  ;;  %231 = vmatpush.msra.mxu2 %v210_v42 }
  0x34   :  { %152 = vmatpush.msra.mxu0 %v123_v28 }
  0x35   :  { %172 = vmatpush.msra.mxu1 %v106_v29  ;;  %232 = vmatpush.msra.mxu2 %v209_v43 }
  0x36   :  { %153 = vmatpush.msra.mxu0 %v122_v30 }
  0x37   :  { %173 = vmatpush.msra.mxu1 %v105_v31  ;;  %154 = vmatmul.f32.vlgmr.msra.gmra.mxu0 %v121_v32 }
  0x38   :  { %174 = vmatmul.f32.vlgmr.msra.gmra.mxu1 %v104_v33  ;;  %233 = vmatpush.msra.mxu2 %v208_v44 }
  0x3a   :  { %234 = vmatpush.msra.mxu2 %v207_v45 }
  0x3c   :  { %235 = vmatpush.msra.mxu2 %v206_v46 }
  0x3e   :  { %236 = vmatpush.msra.mxu2 %v205_v47 }
  0x40   :  { %237 = vmatpush.msra.mxu2 %v204_v48 }
  0x42   :  { %238 = vmatpush.msra.mxu2 %v203_v49 }
  0xb4   :  { %v155_v51 = vpop.f32.mrf.mxu0 }
  0xb5   :  { %v175_v52 = vpop.f32.mrf.mxu1 }
  0xb6   :  { %v176_v53 = vadd.f32 %v175_v52, %v155_v51 }
  0xb8   :  { %v182_v54 = vadd.f32 %v289_v50, %v176_v53 }
  0xba   :  { %v279_v55 = vmul.f32 -1.442695, %v182_v54 }
  0xbc   :  { %291 = vpow2.f32 %v279_v55 }
  0xc2   :  { %v292_v56 = vpop.eup %291 }
  0xc3   :  { %v186_v57 = vadd.f32 1.0, %v292_v56 }
  0xc5   :  { %293 = vrcp.f32 %v186_v57  ;;  %v198_v61 = vand.u32 2147483648, %v186_v57  ;;  %v196_v63 = vand.u32 2147483647, %v186_v57  ;;  %vm192_vm1 = vweird.f32 %v186_v57 }
  0xc7   :  { %v199_v1 = vor.u32 1.1754944e-38, %v198_v61  ;;  %vm197_vm3 = vcmp.eq.f32.partialorder %v196_v63, 8.507059e+37 }
  0xcb   :  { %v294_v58 = vpop.eup %293 }
  0xcc   :  { %v188_v59 = vmul.f32 %v294_v58, %v186_v57  ;;  %vm193_vm0 = vweird.f32 %v294_v58 }
  0xcd   :  { %vm194_vm2 = vmor %vm192_vm1, %vm193_vm0 }
  0xce   :  { %v189_v60 = vsub.f32 1.0, %v188_v59 }
  0xd0   :  { %v190_v62 = vmul.f32 %v294_v58, %v189_v60 }
  0xd2   :  { %v191_v0 = vadd.f32 %v294_v58, %v190_v62 }
  0xd4   :  { %v195_v2 = vsel %vm194_vm2, %v294_v58, %v191_v0 }
  0xd5   :  { %v200_v3 = vsel %vm197_vm3, %v199_v1, %v195_v2 }
  0xd6   :  { %202 = vst [vmem:[#allocation12] sm:$0xff] %v200_v3  ;;  %239 = vmatmul.f32.vlgmr.msra.gmra.mxu2 %v200_v3 }
  0xd7   :  { %265 = dma.vmem_to_hbm [thread:$0]  %s261_s29, 128, %s263_s10, [#allocation13]  }
 0x159   :  { %v240_v5 = vpop.f32.mrf.mxu2 }
 0x15a   :  { %v241_v6 = vadd.f32 %v290_v4, %v240_v5 }
 0x15c   :  { %243 = vst [vmem:[#allocation11] sm:$0xff] %v241_v6 }
 0x15d   :  { %254 = dma.vmem_to_hbm [thread:$0]  %s250_s14, 128, %s252_s17, [#allocation4]  }
 0x15e   :  { %469 = dma.done.wait [#allocation4], 128  }
 0x15f   :  { %470 = vsyncadd [#allocation4], 4294967168 }
 0x160   :  { %471 = dma.done.wait [#allocation13], 128  }
 0x161   :  { %472 = vsyncadd [#allocation13], 4294967168 }
 0x162   :  { %274 = vsyncpa [#allocation3], 1 }
 0x163   :  { %275 = vsyncpa [#allocation6], 1 }
 0x164   :  { %276 = vsyncpa [#allocation9], 1 }
 0x165   :  { %277 = vsyncpa [#allocation4], 1 }
 0x166   :  { %278 = vsyncpa [#allocation13], 1 }

</bundles_post_ra>
